<compile_context>
chip_gen: v5e
topology: v5e:2x2
jax: 0.10.0
libtpu: 0.0.40
codegen_flags: <defaults>
</compile_context>

<pallas_src>
import functools

import jax
import jax.numpy as jnp
from jax.experimental import pallas as pl
from jax.experimental.pallas import tpu as pltpu

MB = 8  # batch rows (contexts) per grid step; sublane-aligned tile


def _round_up(x, m):
    return ((x + m - 1) // m) * m


def _cbow_kernel(ids_ref, emb_ref, w1_ref, b1_ref, w2_ref, b2_ref, out_ref):
    # ids: (MB, C) int32        emb: (V_PAD, E_PAD) f32
    # w1:  (C, E_PAD, H) bf16   b1:  (1, H) f32
    # w2:  (H, V_PAD) bf16      b2:  (1, V_PAD) f32 (-1e30 on padded vocab cols)
    # out: (MB, V_PAD) f32
    C = w1_ref.shape[0]
    V_PAD = emb_ref.shape[0]

    ids = ids_ref[...]                                        # (MB, C) int32
    emb_bf = emb_ref[...].astype(jnp.bfloat16)                # (V_PAD, E_PAD)
    vocab_iota = jax.lax.broadcasted_iota(jnp.int32, (1, V_PAD), 1)

    # Fused embedding lookup + linear1:  h = b1 + sum_c onehot(ids[:,c]) @ emb @ w1[c]
    h = b1_ref[...]                                           # (1, H) f32 -> broadcasts
    for c in range(C):                                        # C is tiny (4); unrolled
        onehot = (ids[:, c:c + 1] == vocab_iota).astype(jnp.bfloat16)   # (MB, V_PAD)
        e_c = jnp.dot(onehot, emb_bf,
                      preferred_element_type=jnp.float32)     # (MB, E_PAD) gathered rows
        h = h + jnp.dot(e_c.astype(jnp.bfloat16), w1_ref[c],
                        preferred_element_type=jnp.float32)   # (MB, H)

    h = jnp.maximum(h, 0.0).astype(jnp.bfloat16)              # ReLU (f32) -> bf16 for MXU
    logits = jnp.dot(h, w2_ref[...],
                     preferred_element_type=jnp.float32) + b2_ref[...]   # (MB, V_PAD) f32

    # log_softmax over the vocab axis; padded vocab columns carry a -1e30 f32
    # bias so exp() of them is exactly 0 and they don't perturb the sum.
    m = jnp.max(logits, axis=-1, keepdims=True)
    s = logits - m
    lse = jnp.log(jnp.sum(jnp.exp(s), axis=-1, keepdims=True))
    out_ref[...] = s - lse


def prepare_params(emb, w1, b1, w2, b2, context_size):
    """Pad / cast model parameters ONCE (hoisted out of the per-call path)."""
    V, E = emb.shape
    D, H = w1.shape
    assert D == context_size * E
    E_PAD = _round_up(E, 8)
    H_PAD = _round_up(H, 128)
    V_PAD = _round_up(V, 128)

    emb_p = jnp.zeros((V_PAD, E_PAD), jnp.float32).at[:V, :E].set(
        emb.astype(jnp.float32))
    # w1 is stored per-context-slot: w1_p[c, e, h] == w1[c*E + e, h]
    w1_p = (jnp.zeros((context_size, E_PAD, H_PAD), jnp.bfloat16)
            .at[:, :E, :H].set(w1.reshape(context_size, E, H).astype(jnp.bfloat16)))
    b1_p = jnp.zeros((1, H_PAD), jnp.float32).at[0, :H].set(b1.astype(jnp.float32))
    w2_p = jnp.zeros((H_PAD, V_PAD), jnp.bfloat16).at[:H, :V].set(
        w2.astype(jnp.bfloat16))
    # Padded vocab columns get a very negative f32 bias -> exp() == 0 in softmax.
    b2_p = jnp.full((1, V_PAD), -1e30, jnp.float32).at[0, :V].set(
        b2.astype(jnp.float32))
    return (emb_p, w1_p, b1_p, w2_p, b2_p)


@functools.partial(jax.jit, static_argnames=("vocab_size",))
def cbow_forward_batched(context_ids, params, *, vocab_size):
    """context_ids: (B, C) int32 -> (B, vocab_size) float32 log-probabilities."""
    emb_p, w1_p, b1_p, w2_p, b2_p = params
    B, C = context_ids.shape
    V_PAD, E_PAD = emb_p.shape
    H = w2_p.shape[0]
    B_PAD = _round_up(B, MB)

    # Only the tiny int32 id array is padded per call; ids of the padded rows
    # are 0 (a valid vocab index) and their outputs are sliced away below.
    ids_p = jnp.zeros((B_PAD, C), jnp.int32).at[:B].set(context_ids.astype(jnp.int32))

    out_p = pl.pallas_call(
        _cbow_kernel,
        out_shape=jax.ShapeDtypeStruct((B_PAD, V_PAD), jnp.float32),
        grid=(B_PAD // MB,),
        in_specs=[
            pl.BlockSpec((MB, C), lambda i: (i, 0)),           # ids: tiled over batch
            pl.BlockSpec((V_PAD, E_PAD), lambda i: (0, 0)),    # weights: constant maps
            pl.BlockSpec((C, E_PAD, H), lambda i: (0, 0, 0)),  #   -> stay VMEM-resident
            pl.BlockSpec((1, H), lambda i: (0, 0)),
            pl.BlockSpec((H, V_PAD), lambda i: (0, 0)),
            pl.BlockSpec((1, V_PAD), lambda i: (0, 0)),
        ],
        out_specs=pl.BlockSpec((MB, V_PAD), lambda i: (i, 0)),  # lane-dense (128) output
        compiler_params=pltpu.CompilerParams(
            dimension_semantics=("parallel",)),                 # batch axis -> 2 TCs on v7x
    )(ids_p, emb_p, w1_p, b1_p, w2_p, b2_p)

    return out_p[:B, :vocab_size]


def cbow_forward(context_ids, params, *, vocab_size):
    """Module semantics: single (C,) context -> (1, vocab_size) log-probs."""
    return cbow_forward_batched(context_ids[None, :], params, vocab_size=vocab_size)


def reference_forward_batched(context_ids, emb, w1, b1, w2, b2):
    """Pure-JAX reference emulating the kernel's bf16-weight / f32-accumulate numerics."""
    bf = lambda a: a.astype(jnp.bfloat16).astype(jnp.float32)
    B, C = context_ids.shape
    x = bf(emb)[context_ids].reshape(B, C * emb.shape[1])
    h = jnp.maximum(x @ bf(w1) + b1, 0.0)
    logits = bf(h) @ bf(w2) + b2
    return jax.nn.log_softmax(logits, axis=-1)


if __name__ == "__main__":
    raw_text = ('We are about to study the idea of a computational process.\n'
                'Computational processes are abstract beings that inhabit computers.\n'
                'As they evolve, processes manipulate other abstract things called data.\n'
                'The evolution of a process is directed by a pattern of rules\n'
                'called a program. People create programs to direct processes. In effect,\n'
                'we conjure the spirits of the computer with our spells.').split()
    vocab_size = len(set(raw_text))          # V (~49)
    embedding_dim = 10                       # E
    context_size = 4                         # C  (2 words left + 2 right)
    hidden = 128

    key = jax.random.PRNGKey(0)
    k_emb, k_w1, k_b1, k_w2, k_b2, k_in, k_batch = jax.random.split(key, 7)

    # Deterministic parameter init (shapes match nn.Embedding / nn.Linear).
    emb = jax.random.normal(k_emb, (vocab_size, embedding_dim), jnp.float32)
    lim1 = 1.0 / jnp.sqrt(context_size * embedding_dim)
    w1 = jax.random.uniform(k_w1, (context_size * embedding_dim, hidden),
                            jnp.float32, -lim1, lim1)
    b1 = jax.random.uniform(k_b1, (hidden,), jnp.float32, -lim1, lim1)
    lim2 = 1.0 / jnp.sqrt(hidden)
    w2 = jax.random.uniform(k_w2, (hidden, vocab_size), jnp.float32, -lim2, lim2)
    b2 = jax.random.uniform(k_b2, (vocab_size,), jnp.float32, -lim2, lim2)

    # Pad / cast the weights exactly once.
    params = prepare_params(emb, w1, b1, w2, b2, context_size)
    jax.block_until_ready(params)

    # 1) Module semantics: one context of 4 ids -> (1, V) log-probs.
    inputs = jax.random.randint(k_in, (context_size,), 0, vocab_size, jnp.int32)
    log_probs = cbow_forward(inputs, params, vocab_size=vocab_size)
    jax.block_until_ready(log_probs)
    ref = reference_forward_batched(inputs[None, :], emb, w1, b1, w2, b2)
    assert log_probs.shape == (1, vocab_size)
    assert jnp.allclose(log_probs, ref, atol=1e-3, rtol=1e-3), "single-context mismatch"

    # 2) Batched path (weights stay VMEM-resident across the batch grid).
    batch = 16
    batch_ids = jax.random.randint(k_batch, (batch, context_size), 0, vocab_size,
                                   jnp.int32)
    log_probs_b = cbow_forward_batched(batch_ids, params, vocab_size=vocab_size)
    jax.block_until_ready(log_probs_b)
    ref_b = reference_forward_batched(batch_ids, emb, w1, b1, w2, b2)
    assert log_probs_b.shape == (batch, vocab_size)
    assert jnp.allclose(log_probs_b, ref_b, atol=1e-3, rtol=1e-3), "batched mismatch"

    print("KERNEL_OK")
</pallas_src>

<mosaic_0001>
module attributes {stable_mosaic.version = 11 : i64} {
  func.func @_cbow_kernel(%arg0: i32, %arg1: memref<8x4xi32, #tpu.memory_space<vmem>>, %arg2: memref<128x16xf32, #tpu.memory_space<vmem>>, %arg3: memref<4x16x128xbf16, #tpu.memory_space<vmem>>, %arg4: memref<1x128xf32, #tpu.memory_space<vmem>>, %arg5: memref<128x128xbf16, #tpu.memory_space<vmem>>, %arg6: memref<1x128xf32, #tpu.memory_space<vmem>>, %arg7: memref<8x128xf32, #tpu.memory_space<vmem>>) attributes {dimension_semantics = [#tpu.dimension_semantics<parallel>], iteration_bounds = array<i64: 1>, scalar_prefetch = 0 : i64, scratch_operands = 0 : i64, tpu.core_type = #tpu.core_type<tc>, window_params = [{transform_indices = @transform_0, window_bounds = array<i64: 8, 4>}, {pipeline_mode = #tpu.pipeline_mode<synchronous>, transform_indices = @transform_1, window_bounds = array<i64: 128, 16>}, {pipeline_mode = #tpu.pipeline_mode<synchronous>, transform_indices = @transform_2, window_bounds = array<i64: 4, 16, 128>}, {pipeline_mode = #tpu.pipeline_mode<synchronous>, transform_indices = @transform_3, window_bounds = array<i64: 1, 128>}, {pipeline_mode = #tpu.pipeline_mode<synchronous>, transform_indices = @transform_4, window_bounds = array<i64: 128, 128>}, {pipeline_mode = #tpu.pipeline_mode<synchronous>, transform_indices = @transform_5, window_bounds = array<i64: 1, 128>}, {transform_indices = @transform_6, window_bounds = array<i64: 8, 128>}]} {
    %c0 = arith.constant 0 : index
    %c0_0 = arith.constant 0 : index
    %0 = vector.load %arg1[%c0, %c0_0] : memref<8x4xi32, #tpu.memory_space<vmem>>, vector<8x4xi32>
    %c0_1 = arith.constant 0 : index
    %c0_2 = arith.constant 0 : index
    %1 = vector.load %arg2[%c0_1, %c0_2] : memref<128x16xf32, #tpu.memory_space<vmem>>, vector<128x16xf32>
    %2 = arith.truncf %1 : vector<128x16xf32> to vector<128x16xbf16>
    %3 = tpu.iota {dimensions = array<i32: 1>} : vector<1x128xi32>
    %c0_3 = arith.constant 0 : index
    %c0_4 = arith.constant 0 : index
    %4 = vector.load %arg4[%c0_3, %c0_4] : memref<1x128xf32, #tpu.memory_space<vmem>>, vector<1x128xf32>
    %5 = vector.extract_strided_slice %0 {offsets = [0, 0], sizes = [8, 1], strides = [1, 1]} : vector<8x4xi32> to vector<8x1xi32>
    %6 = vector.broadcast %5 : vector<8x1xi32> to vector<8x128xi32>
    %7 = vector.broadcast %3 : vector<1x128xi32> to vector<8x128xi32>
    %8 = arith.cmpi eq, %6, %7 : vector<8x128xi32>
    %9 = arith.extui %8 : vector<8x128xi1> to vector<8x128xi32>
    %10 = arith.sitofp %9 : vector<8x128xi32> to vector<8x128xf32>
    %11 = arith.truncf %10 : vector<8x128xf32> to vector<8x128xbf16>
    %cst = arith.constant dense<0.000000e+00> : vector<8x16xf32>
    %12 = tpu.matmul %11, %2, %cst {dimension_numbers = #tpu.dot_dimension_numbers<[1], [0], [0], [1], [0, 0, 1, 1], [], []>} : vector<8x128xbf16>, vector<128x16xbf16>, vector<8x16xf32> -> vector<8x16xf32>
    %13 = arith.truncf %12 : vector<8x16xf32> to vector<8x16xbf16>
    %c0_5 = arith.constant 0 : index
    %c0_6 = arith.constant 0 : index
    %c0_7 = arith.constant 0 : index
    %14 = vector.load %arg3[%c0_5, %c0_6, %c0_7] : memref<4x16x128xbf16, #tpu.memory_space<vmem>>, vector<1x16x128xbf16>
    %15 = vector.shape_cast %14 : vector<1x16x128xbf16> to vector<16x128xbf16>
    %cst_8 = arith.constant dense<0.000000e+00> : vector<8x128xf32>
    %16 = tpu.matmul %13, %15, %cst_8 {dimension_numbers = #tpu.dot_dimension_numbers<[1], [0], [0], [1], [0, 0, 1, 1], [], []>} : vector<8x16xbf16>, vector<16x128xbf16>, vector<8x128xf32> -> vector<8x128xf32>
    %17 = vector.broadcast %4 : vector<1x128xf32> to vector<8x128xf32>
    %18 = arith.addf %17, %16 : vector<8x128xf32>
    %19 = vector.extract_strided_slice %0 {offsets = [0, 1], sizes = [8, 1], strides = [1, 1]} : vector<8x4xi32> to vector<8x1xi32>
    %20 = vector.broadcast %19 : vector<8x1xi32> to vector<8x128xi32>
    %21 = vector.broadcast %3 : vector<1x128xi32> to vector<8x128xi32>
    %22 = arith.cmpi eq, %20, %21 : vector<8x128xi32>
    %23 = arith.extui %22 : vector<8x128xi1> to vector<8x128xi32>
    %24 = arith.sitofp %23 : vector<8x128xi32> to vector<8x128xf32>
    %25 = arith.truncf %24 : vector<8x128xf32> to vector<8x128xbf16>
    %cst_9 = arith.constant dense<0.000000e+00> : vector<8x16xf32>
    %26 = tpu.matmul %25, %2, %cst_9 {dimension_numbers = #tpu.dot_dimension_numbers<[1], [0], [0], [1], [0, 0, 1, 1], [], []>} : vector<8x128xbf16>, vector<128x16xbf16>, vector<8x16xf32> -> vector<8x16xf32>
    %27 = arith.truncf %26 : vector<8x16xf32> to vector<8x16xbf16>
    %c1 = arith.constant 1 : index
    %c0_10 = arith.constant 0 : index
    %c0_11 = arith.constant 0 : index
    %28 = vector.load %arg3[%c1, %c0_10, %c0_11] : memref<4x16x128xbf16, #tpu.memory_space<vmem>>, vector<1x16x128xbf16>
    %29 = vector.shape_cast %28 : vector<1x16x128xbf16> to vector<16x128xbf16>
    %cst_12 = arith.constant dense<0.000000e+00> : vector<8x128xf32>
    %30 = tpu.matmul %27, %29, %cst_12 {dimension_numbers = #tpu.dot_dimension_numbers<[1], [0], [0], [1], [0, 0, 1, 1], [], []>} : vector<8x16xbf16>, vector<16x128xbf16>, vector<8x128xf32> -> vector<8x128xf32>
    %31 = arith.addf %18, %30 : vector<8x128xf32>
    %32 = vector.extract_strided_slice %0 {offsets = [0, 2], sizes = [8, 1], strides = [1, 1]} : vector<8x4xi32> to vector<8x1xi32>
    %33 = vector.broadcast %32 : vector<8x1xi32> to vector<8x128xi32>
    %34 = vector.broadcast %3 : vector<1x128xi32> to vector<8x128xi32>
    %35 = arith.cmpi eq, %33, %34 : vector<8x128xi32>
    %36 = arith.extui %35 : vector<8x128xi1> to vector<8x128xi32>
    %37 = arith.sitofp %36 : vector<8x128xi32> to vector<8x128xf32>
    %38 = arith.truncf %37 : vector<8x128xf32> to vector<8x128xbf16>
    %cst_13 = arith.constant dense<0.000000e+00> : vector<8x16xf32>
    %39 = tpu.matmul %38, %2, %cst_13 {dimension_numbers = #tpu.dot_dimension_numbers<[1], [0], [0], [1], [0, 0, 1, 1], [], []>} : vector<8x128xbf16>, vector<128x16xbf16>, vector<8x16xf32> -> vector<8x16xf32>
    %40 = arith.truncf %39 : vector<8x16xf32> to vector<8x16xbf16>
    %c2 = arith.constant 2 : index
    %c0_14 = arith.constant 0 : index
    %c0_15 = arith.constant 0 : index
    %41 = vector.load %arg3[%c2, %c0_14, %c0_15] : memref<4x16x128xbf16, #tpu.memory_space<vmem>>, vector<1x16x128xbf16>
    %42 = vector.shape_cast %41 : vector<1x16x128xbf16> to vector<16x128xbf16>
    %cst_16 = arith.constant dense<0.000000e+00> : vector<8x128xf32>
    %43 = tpu.matmul %40, %42, %cst_16 {dimension_numbers = #tpu.dot_dimension_numbers<[1], [0], [0], [1], [0, 0, 1, 1], [], []>} : vector<8x16xbf16>, vector<16x128xbf16>, vector<8x128xf32> -> vector<8x128xf32>
    %44 = arith.addf %31, %43 : vector<8x128xf32>
    %45 = vector.extract_strided_slice %0 {offsets = [0, 3], sizes = [8, 1], strides = [1, 1]} : vector<8x4xi32> to vector<8x1xi32>
    %46 = vector.broadcast %45 : vector<8x1xi32> to vector<8x128xi32>
    %47 = vector.broadcast %3 : vector<1x128xi32> to vector<8x128xi32>
    %48 = arith.cmpi eq, %46, %47 : vector<8x128xi32>
    %49 = arith.extui %48 : vector<8x128xi1> to vector<8x128xi32>
    %50 = arith.sitofp %49 : vector<8x128xi32> to vector<8x128xf32>
    %51 = arith.truncf %50 : vector<8x128xf32> to vector<8x128xbf16>
    %cst_17 = arith.constant dense<0.000000e+00> : vector<8x16xf32>
    %52 = tpu.matmul %51, %2, %cst_17 {dimension_numbers = #tpu.dot_dimension_numbers<[1], [0], [0], [1], [0, 0, 1, 1], [], []>} : vector<8x128xbf16>, vector<128x16xbf16>, vector<8x16xf32> -> vector<8x16xf32>
    %53 = arith.truncf %52 : vector<8x16xf32> to vector<8x16xbf16>
    %c3 = arith.constant 3 : index
    %c0_18 = arith.constant 0 : index
    %c0_19 = arith.constant 0 : index
    %54 = vector.load %arg3[%c3, %c0_18, %c0_19] : memref<4x16x128xbf16, #tpu.memory_space<vmem>>, vector<1x16x128xbf16>
    %55 = vector.shape_cast %54 : vector<1x16x128xbf16> to vector<16x128xbf16>
    %cst_20 = arith.constant dense<0.000000e+00> : vector<8x128xf32>
    %56 = tpu.matmul %53, %55, %cst_20 {dimension_numbers = #tpu.dot_dimension_numbers<[1], [0], [0], [1], [0, 0, 1, 1], [], []>} : vector<8x16xbf16>, vector<16x128xbf16>, vector<8x128xf32> -> vector<8x128xf32>
    %57 = arith.addf %44, %56 : vector<8x128xf32>
    %cst_21 = arith.constant 0.000000e+00 : f32
    %58 = vector.broadcast %cst_21 : f32 to vector<8x128xf32>
    %59 = arith.maximumf %57, %58 : vector<8x128xf32>
    %60 = arith.truncf %59 : vector<8x128xf32> to vector<8x128xbf16>
    %c0_22 = arith.constant 0 : index
    %c0_23 = arith.constant 0 : index
    %61 = vector.load %arg5[%c0_22, %c0_23] : memref<128x128xbf16, #tpu.memory_space<vmem>>, vector<128x128xbf16>
    %cst_24 = arith.constant dense<0.000000e+00> : vector<8x128xf32>
    %62 = tpu.matmul %60, %61, %cst_24 {dimension_numbers = #tpu.dot_dimension_numbers<[1], [0], [0], [1], [0, 0, 1, 1], [], []>} : vector<8x128xbf16>, vector<128x128xbf16>, vector<8x128xf32> -> vector<8x128xf32>
    %c0_25 = arith.constant 0 : index
    %c0_26 = arith.constant 0 : index
    %63 = vector.load %arg6[%c0_25, %c0_26] : memref<1x128xf32, #tpu.memory_space<vmem>>, vector<1x128xf32>
    %64 = vector.broadcast %63 : vector<1x128xf32> to vector<8x128xf32>
    %65 = arith.addf %62, %64 : vector<8x128xf32>
    %cst_27 = arith.constant dense<0xFF800000> : vector<8xf32>
    %66 = vector.multi_reduction <maximumf>, %65, %cst_27 [1] : vector<8x128xf32> to vector<8xf32>
    %67 = vector.shape_cast %66 : vector<8xf32> to vector<8x1xf32>
    %68 = vector.broadcast %67 : vector<8x1xf32> to vector<8x128xf32>
    %69 = arith.subf %65, %68 : vector<8x128xf32>
    %70 = math.exp %69 : vector<8x128xf32>
    %cst_28 = arith.constant dense<0.000000e+00> : vector<8xf32>
    %71 = vector.multi_reduction <add>, %70, %cst_28 [1] : vector<8x128xf32> to vector<8xf32>
    %72 = vector.shape_cast %71 : vector<8xf32> to vector<8x1xf32>
    %73 = math.log %72 : vector<8x1xf32>
    %74 = vector.broadcast %73 : vector<8x1xf32> to vector<8x128xf32>
    %75 = arith.subf %69, %74 : vector<8x128xf32>
    %c0_29 = arith.constant 0 : index
    %c0_30 = arith.constant 0 : index
    %76 = vector.load %arg7[%c0_29, %c0_30] : memref<8x128xf32, #tpu.memory_space<vmem>>, vector<8x128xf32>
    tpu.vector_store %arg7[%c0_29, %c0_30], %75 {strides = array<i32>} : memref<8x128xf32, #tpu.memory_space<vmem>>, vector<8x128xf32>,
    return
  }
  func.func @transform_0(%arg0: i32) -> (i32, i32) {
    %c0_i32 = arith.constant 0 : i32
    %c0_i32_0 = arith.constant 0 : i32
    return %arg0, %c0_i32 : i32, i32
  }
  func.func @transform_1(%arg0: i32) -> (i32, i32) {
    %c0_i32 = arith.constant 0 : i32
    %c0_i32_0 = arith.constant 0 : i32
    %c0_i32_1 = arith.constant 0 : i32
    return %c0_i32, %c0_i32_0 : i32, i32
  }
  func.func @transform_2(%arg0: i32) -> (i32, i32, i32) {
    %c0_i32 = arith.constant 0 : i32
    %c0_i32_0 = arith.constant 0 : i32
    %c0_i32_1 = arith.constant 0 : i32
    %c0_i32_2 = arith.constant 0 : i32
    return %c0_i32, %c0_i32_0, %c0_i32_1 : i32, i32, i32
  }
  func.func @transform_3(%arg0: i32) -> (i32, i32) {
    %c0_i32 = arith.constant 0 : i32
    %c0_i32_0 = arith.constant 0 : i32
    %c0_i32_1 = arith.constant 0 : i32
    return %c0_i32, %c0_i32_0 : i32, i32
  }
  func.func @transform_4(%arg0: i32) -> (i32, i32) {
    %c0_i32 = arith.constant 0 : i32
    %c0_i32_0 = arith.constant 0 : i32
    %c0_i32_1 = arith.constant 0 : i32
    return %c0_i32, %c0_i32_0 : i32, i32
  }
  func.func @transform_5(%arg0: i32) -> (i32, i32) {
    %c0_i32 = arith.constant 0 : i32
    %c0_i32_0 = arith.constant 0 : i32
    %c0_i32_1 = arith.constant 0 : i32
    return %c0_i32, %c0_i32_0 : i32, i32
  }
  func.func @transform_6(%arg0: i32) -> (i32, i32) {
    %c0_i32 = arith.constant 0 : i32
    %c0_i32_0 = arith.constant 0 : i32
    return %arg0, %c0_i32 : i32, i32
  }
}

</mosaic_0001>

<bundles_post_ra>
// kernel: cbow_forward_batched.1
= control target key start
LH: loop header
LB: loop body
LE: loop exit
PB: predicated region body
PF: predicated region fallthrough
CT: control target
= control target key end

     0   :  { %v439_v0 = vmov 0   ;;  %v440_v13 = vmov 1   ;;  %v441_v28 = vmov 2   ;;  %v49_v29 = vlaneseq  ;;  %s621_s0 = inlined_call_operand.vmem [shape: s32[8,4], index: 0, kind: input, shape index: {}]   ;;  %s622_s1 = inlined_call_operand.vmem [shape: f32[128,16], index: 1, kind: input, shape index: {}]   ;;  %s623_s2 = inlined_call_operand.vmem [shape: bf16[4,16,128], index: 2, kind: input, shape index: {}]   ;;  %s624_s3 = inlined_call_operand.vmem [shape: f32[1,128], index: 3, kind: input, shape index: {}]   ;;  %s625_s4 = inlined_call_operand.vmem [shape: bf16[128,128], index: 4, kind: input, shape index: {}]   ;;  %s626_s5 = inlined_call_operand.vmem [shape: f32[1,128], index: 5, kind: input, shape index: {}]   ;;  %s627_s6 = inlined_call_operand.vmem [shape: f32[8,128], index: 6, kind: output, shape index: {}]  }
   0x1   :  { %428 = vset.pattern.permute.xlu0 %v439_v0  ;;  %v482_v1 = vld [vmem:[%s621_s0] sm:$0xff]  ;;  %v39_v2 = vld [vmem:[%s622_s1 + $0x70] sm:$0xff]  ;;  %v40_v3 = vld [vmem:[%s622_s1 + $0x78] sm:$0xff]  ;;  %430 = vset.pattern.permute.xlu1 %v441_v28  ;;  %v442_v32 = vmov 1.0|1.0   ;;  %v443_v35 = vmov 3  }
   0x2   :  { %53 = vperm.xlu0 %428, %v482_v1   ;;  %v491_v4 = vpack.c.bf16 %v40_v3, %v39_v2  ;;  %v37_v5 = vld [vmem:[%s622_s1 + $0x60] sm:$0xff]  ;;  %v38_v6 = vld [vmem:[%s622_s1 + $0x68] sm:$0xff]  ;;  %v35_v8 = vld [vmem:[%s622_s1 + $0x50] sm:$0xff]  ;;  %150 = vperm.xlu1 %430, %v482_v1   ;;  %v50_v30 = vand.u32 127, %v49_v29  ;;  %vm81_vm4 = vcmask 130048  }
   0x3   :  { %v500_v7 = vpack.c.bf16 %v38_v6, %v37_v5  ;;  %v36_v9 = vld [vmem:[%s622_s1 + $0x58] sm:$0xff]  ;;  %v33_v11 = vld [vmem:[%s622_s1 + $0x40] sm:$0xff]  ;;  %v34_v12 = vld [vmem:[%s622_s1 + $0x48] sm:$0xff] }
   0x4   :  { %59 = vmatpush.bf16.msra.mxu0 %v491_v4  ;;  %109 = vmatpush.bf16.msra.mxu2 %v491_v4  ;;  %v510_v10 = vpack.c.bf16 %v36_v9, %v35_v8  ;;  %v521_v14 = vpack.c.bf16 %v34_v12, %v33_v11  ;;  %v31_v15 = vld [vmem:[%s622_s1 + $0x30] sm:$0xff]  ;;  %v32_v16 = vld [vmem:[%s622_s1 + $0x38] sm:$0xff]  ;;  %v29_v18 = vld [vmem:[%s622_s1 + $0x20] sm:$0xff] }
   0x5   :  { %v531_v17 = vpack.c.bf16 %v32_v16, %v31_v15  ;;  %v30_v19 = vld [vmem:[%s622_s1 + $0x28] sm:$0xff]  ;;  %v27_v21 = vld [vmem:[%s622_s1 + $0x10] sm:$0xff]  ;;  %v28_v22 = vld [vmem:[%s622_s1 + $0x18] sm:$0xff] }
   0x6   :  { %v541_v20 = vpack.c.bf16 %v30_v19, %v29_v18  ;;  %v42_v23 = vpack.c.bf16 %v28_v22, %v27_v21  ;;  %v25_v24 = vld [vmem:[%s622_s1] sm:$0xff]  ;;  %v26_v25 = vld [vmem:[%s622_s1 + $0x8] sm:$0xff]  ;;  %v413_v43 = vld [vmem:[%s623_s2 + $0x10] sm:$0xff] }
   0x7   :  { %v41_v26 = vpack.c.bf16 %v26_v25, %v25_v24  ;;  %v411_v27 = vld [vmem:[%s623_s2] sm:$0xff]  ;;  %v412_v34 = vld [vmem:[%s623_s2 + $0x8] sm:$0xff]  ;;  %v414_v55 = vld [vmem:[%s623_s2 + $0x18] sm:$0xff] }
   0x8   :  { %60 = vmatpush.bf16.msra.mxu0 %v500_v7  ;;  %110 = vmatpush.bf16.msra.mxu2 %v500_v7  ;;  %v433_v46 = vld [vmem:[%s624_s3] ss:$0 sm:$0xff]  ;;  %v422_v56 = vld [vmem:[%s625_s4 + $0x38] sm:$0xff]  ;;  %v421_v57 = vld [vmem:[%s625_s4 + $0x30] sm:$0xff] }
   0x9   :  { %92 = vmatpush.bf16.msra.mxu1 %v411_v27  ;;  %142 = vmatpush.bf16.msra.mxu3 %v412_v34  ;;  %v420_v58 = vld [vmem:[%s625_s4 + $0x28] sm:$0xff]  ;;  %v419_v61 = vld [vmem:[%s625_s4 + $0x20] sm:$0xff]  ;;  %v418_v62 = vld [vmem:[%s625_s4 + $0x18] sm:$0xff] }
   0xa   :  { %429 = vset.pattern.permute.xlu0 %v440_v13  ;;  %431 = vset.pattern.permute.xlu1 %v443_v35  ;;  %v417_v0 = vld [vmem:[%s625_s4 + $0x10] sm:$0xff]  ;;  %v415_v5 = vld [vmem:[%s625_s4] sm:$0xff] }
   0xb   :  { %103 = vperm.xlu0 %429, %v482_v1   ;;  %197 = vperm.xlu1 %431, %v482_v1   ;;  %v434_v11 = vld [vmem:[%s626_s5] ss:$0 sm:$0xff] }
   0xc   :  { %61 = vmatpush.bf16.msra.mxu0 %v510_v10  ;;  %111 = vmatpush.bf16.msra.mxu2 %v510_v10 }
   0xd   :  { %156 = vmatpush.bf16.msrb.mxu1 %v491_v4  ;;  %189 = vmatpush.bf16.msrb.mxu3 %v413_v43 }
  0x10   :  { %62 = vmatpush.bf16.msra.mxu0 %v521_v14  ;;  %112 = vmatpush.bf16.msra.mxu2 %v521_v14 }
  0x11   :  { %157 = vmatpush.bf16.msrb.mxu1 %v500_v7 }
  0x13   :  { %432 = vset.pattern.permute.xlu0 %v443_v35 }
  0x14   :  { %63 = vmatpush.bf16.msra.mxu0 %v531_v17  ;;  %113 = vmatpush.bf16.msra.mxu2 %v531_v17 }
  0x15   :  { %158 = vmatpush.bf16.msrb.mxu1 %v510_v10 }
  0x18   :  { %64 = vmatpush.bf16.msra.mxu0 %v541_v20  ;;  %114 = vmatpush.bf16.msra.mxu2 %v541_v20 }
  0x19   :  { %159 = vmatpush.bf16.msrb.mxu1 %v521_v14 }
  0x1c   :  { %65 = vmatpush.bf16.msra.mxu0 %v42_v23  ;;  %115 = vmatpush.bf16.msra.mxu2 %v42_v23 }
  0x1d   :  { %160 = vmatpush.bf16.msrb.mxu1 %v531_v17 }
  0x20   :  { %66 = vmatpush.bf16.msra.mxu0 %v41_v26  ;;  %116 = vmatpush.bf16.msra.mxu2 %v41_v26 }
  0x21   :  { %161 = vmatpush.bf16.msrb.mxu1 %v541_v20 }
  0x24   :  { %236 = vmatpush.bf16.msrb.mxu0 %v414_v55  ;;  %313 = vmatpush.bf16.msrb.mxu2 %v422_v56 }
  0x25   :  { %162 = vmatpush.bf16.msrb.mxu1 %v42_v23 }
  0x28   :  { %314 = vmatpush.bf16.msrb.mxu2 %v421_v57 }
  0x29   :  { %163 = vmatpush.bf16.msrb.mxu1 %v41_v26 }
  0x2c   :  { %315 = vmatpush.bf16.msrb.mxu2 %v420_v58 }
  0x30   :  { %316 = vmatpush.bf16.msrb.mxu2 %v419_v61 }
  0x34   :  { %317 = vmatpush.bf16.msrb.mxu2 %v418_v62 }
  0x38   :  { %318 = vmatpush.bf16.msrb.mxu2 %v417_v0 }
  0x74   :  { %v54_v31 = vpop.permute.xlu0 %53  ;;  %v151_v39 = vpop.permute.xlu1 %150 }
  0x75   :  { %vm55_vm0 = vcmp.eq.s32.totalorder %v54_v31, %v50_v30  ;;  %vm152_vm5 = vcmp.eq.s32.totalorder %v151_v39, %v50_v30 }
  0x76   :  { %vm342_vm1 = vmpackc.low %vm55_vm0, %vm55_vm0 }
  0x77   :  { %343 = vmatmul.msk.bf16.vlgmr.msra.gmra.mxu0 %vm342_vm1, %v442_v32  ;;  %vm360_vm6 = vmpackc.low %vm152_vm5, %vm152_vm5 }
  0x7d   :  { %v104_v33 = vpop.permute.xlu0 %103  ;;  %v198_v53 = vpop.permute.xlu1 %197 }
  0x7e   :  { %vm105_vm2 = vcmp.eq.s32.totalorder %v104_v33, %v50_v30  ;;  %vm199_vm7 = vcmp.eq.s32.totalorder %v198_v53, %v50_v30 }
  0x7f   :  { %vm350_vm3 = vmpackc.low %vm105_vm2, %vm105_vm2 }
  0x80   :  { %351 = vmatmul.msk.bf16.vlgmr.msra.gmra.mxu2 %vm350_vm3, %v442_v32  ;;  %vm370_vm8 = vmpackc.low %vm199_vm7, %vm199_vm7 }
  0xf4   :  { %v68_v36 = vpop.f32.mrf.mxu0 }
  0xf5   :  { %v72_v37 = vpack.c.bf16 %v68_v36, %v68_v36 }
  0xf7   :  { %348 = vmatmul.msk.bf16.vlgmr.msra.gmra.mxu1 %vm81_vm4, %v72_v37 }
  0xfc   :  { %v70_v38 = vpop.f32.mrf.mxu0 }
 0x103   :  { %v118_v40 = vpop.f32.mrf.mxu2 }
 0x104   :  { %v122_v41 = vpack.c.bf16 %v118_v40, %v118_v40 }
 0x106   :  { %358 = vmatmul.msk.bf16.vlgmr.msra.gmra.mxu3 %vm81_vm4, %v122_v41 }
 0x107   :  { %361 = vmatmul.msk.bf16.vlgmr.msrb.gmra.mxu1 %vm360_vm6, %v442_v32  ;;  %203 = vmatpush.bf16.msra.mxu3 %v491_v4  ;;  %v416_v4 = vld [vmem:[%s625_s4 + $0x8] sm:$0xff] }
 0x108   :  { %319 = vmatpush.bf16.msrb.mxu2 %v416_v4 }
 0x10b   :  { %v120_v42 = vpop.f32.mrf.mxu2  ;;  %204 = vmatpush.bf16.msra.mxu3 %v500_v7 }
 0x10c   :  { %320 = vmatpush.bf16.msrb.mxu2 %v415_v5 }
 0x10f   :  { %205 = vmatpush.bf16.msra.mxu3 %v510_v10 }
 0x113   :  { %206 = vmatpush.bf16.msra.mxu3 %v521_v14 }
 0x117   :  { %207 = vmatpush.bf16.msra.mxu3 %v531_v17 }
 0x11b   :  { %208 = vmatpush.bf16.msra.mxu3 %v541_v20 }
 0x11f   :  { %209 = vmatpush.bf16.msra.mxu3 %v42_v23 }
 0x123   :  { %210 = vmatpush.bf16.msra.mxu3 %v41_v26 }
 0x174   :  { %v94_v44 = vpop.f32.mrf.mxu1 }
 0x175   :  { %v101_v49 = vadd.f32 %v433_v46, %v94_v44 }
 0x17c   :  { %v96_v45 = vpop.f32.mrf.mxu1 }
 0x184   :  { %v165_v47 = vpop.f32.mrf.mxu1 }
 0x185   :  { %v169_v48 = vpack.c.bf16 %v165_v47, %v165_v47 }
 0x187   :  { %368 = vmatmul.msk.bf16.vlgmr.msrb.gmra.mxu3 %vm81_vm4, %v169_v48 }
 0x189   :  { %v144_v50 = vpop.f32.mrf.mxu3 }
 0x18a   :  { %v148_v51 = vadd.f32 %v144_v50, %v101_v49 }
 0x18c   :  { %v167_v52 = vpop.f32.mrf.mxu1 }
 0x191   :  { %v146_v54 = vpop.f32.mrf.mxu3 }
 0x197   :  { %371 = vmatmul.msk.bf16.vlgmr.msra.gmra.mxu3 %vm370_vm8, %v442_v32 }
 0x20a   :  { %v191_v59 = vpop.f32.mrf.mxu3 }
 0x20b   :  { %v195_v60 = vadd.f32 %v191_v59, %v148_v51 }
 0x212   :  { %v193_v63 = vpop.f32.mrf.mxu3 }
 0x21a   :  { %v212_v1 = vpop.f32.mrf.mxu3 }
 0x21b   :  { %v216_v2 = vpack.c.bf16 %v212_v1, %v212_v1 }
 0x21d   :  { %378 = vmatmul.msk.bf16.vlgmr.msrb.gmra.mxu0 %vm81_vm4, %v216_v2 }
 0x222   :  { %v214_v3 = vpop.f32.mrf.mxu3 }
 0x29a   :  { %v238_v6 = vpop.f32.mrf.mxu0 }
 0x29b   :  { %v242_v7 = vadd.f32 %v238_v6, %v195_v60 }
 0x29d   :  { %v243_v8 = vmax.f32 %v242_v7, 0.0 }
 0x29f   :  { %v244_v9 = vpack.c.bf16 %v243_v8, %v243_v8 }
 0x2a1   :  { %321 = vmatmul.bf16.vlgmr.msrb.gmra.mxu2 %v244_v9 }
 0x2a2   :  { %v240_v10 = vpop.f32.mrf.mxu0 }
 0x324   :  { %v322_v12 = vpop.f32.mrf.mxu2 }
 0x325   :  { %v323_v13 = vadd.f32 %v434_v11, %v322_v12 }
 0x327   :  { %326 = vmax.xlane.f32.xlu2 %v323_v13 }
 0x32c   :  { %v324_v14 = vpop.f32.mrf.mxu2 }
 0x39a   :  { %v327_v15 = vpop.xlane.xlu2 %326 }
 0x39b   :  { %v328_v16 = vsub.f32 %v323_v13, %v327_v15 }
 0x39d   :  { %v329_v17 = vmul.f32 1.442695, %v328_v16 }
 0x39f   :  { %435 = vpow2.f32 %v329_v17 }
 0x3a5   :  { %v436_v18 = vpop.eup %435 }
 0x3a6   :  { %331 = vadd.xlane.f32.xlu2 %v436_v18 }
 0x419   :  { %v332_v19 = vpop.xlane.xlu2 %331 }
 0x41a   :  { %437 = vlog2.f32 %v332_v19 }
 0x420   :  { %v438_v20 = vpop.eup %437 }
 0x421   :  { %v334_v21 = vmul.f32 0.6931472, %v438_v20 }
 0x423   :  { %v335_v22 = vsub.f32 %v328_v16, %v334_v21 }
 0x425   :  { %336 = vst [vmem:[%s627_s6] sm:$0xff] %v335_v22 }

</bundles_post_ra>
